<compile_context>
chip_gen: v6e
topology: v6e:2x2x1
jax: 0.10.0
libtpu: 0.0.40
codegen_flags: <defaults>
</compile_context>

<pallas_src>
import functools

import numpy as np
import jax
import jax.numpy as jnp
from jax.experimental import pallas as pl
from jax.experimental.pallas import tpu as pltpu

# torch: np.log(torch.finfo(torch.float32).max) - 0.0001
CLIP_EXP_THR = float(np.log(np.finfo(np.float32).max) - 1e-4)
BN_EPS = 1e-3  # scvi FCLayers: BatchNorm1d(..., eps=0.001)


def _round_up(x, m):
    return ((x + m - 1) // m) * m


def _cdiv(a, b):
    return -(-a // b)


# ----------------------------------------------------------------------------- kernel


def _encoder_decoder_kernel(n_cov, hp,
                            xc_ref, w0_ref, b0_ref, w12c_ref,
                            w1h_ref, b1_ref, w2h_ref, b2_ref,
                            wm_ref, bm_ref, qm_ref):
    """One row tile of the 3-layer FCLayers stack + mean head.

    xc = [cov | x] streamed in bf16; weights are bf16 with eval-mode BatchNorm scale/shift
    and the linear bias folded in (wrapper); all dots accumulate in f32 on the MXU, and the
    bias add / ReLU / nan_to_num run in f32.
    """
    xc = xc_ref[...]                         # (tb, n_cov + n_input)  bf16
    cov = xc[:, :n_cov]                      # covariates are the leading lanes

    # Covariate contributions of layers 1 and 2 in a single MXU pass: cov @ [W1c | W2c].
    covc = jnp.dot(cov, w12c_ref[...], preferred_element_type=jnp.float32)   # (tb, 2*hp) f32
    c1 = covc[:, :hp]
    c2 = covc[:, hp:]

    # Layer 0: single dot against the full folded [W0c; W0h].
    h = jnp.dot(xc, w0_ref[...], preferred_element_type=jnp.float32) + b0_ref[...]
    h = jnp.maximum(h, 0.0)                  # ReLU; Dropout is identity in eval mode

    # Layer 1.
    h = jnp.dot(h.astype(w1h_ref.dtype), w1h_ref[...],
                preferred_element_type=jnp.float32) + c1 + b1_ref[...]
    h = jnp.maximum(h, 0.0)

    # Layer 2.
    h = jnp.dot(h.astype(w2h_ref.dtype), w2h_ref[...],
                preferred_element_type=jnp.float32) + c2 + b2_ref[...]
    h = jnp.maximum(h, 0.0)

    # mean_encoder: Linear(n_hidden, n_output), then nan/inf -> numeric (torch.nan_to_num).
    qm = jnp.dot(h.astype(wm_ref.dtype), wm_ref[...],
                 preferred_element_type=jnp.float32) + bm_ref[...]
    qm_ref[...] = jnp.nan_to_num(qm)


# ----------------------------------------------------------------------------- parameters


def init_params(key, n_input, n_output, n_cov, n_hidden):
    """Deterministic synthetic parameters mirroring the module's shapes."""
    params = {}
    keys = jax.random.split(key, 8)

    def linear(k, fan_in, fan_out):
        k1, k2 = jax.random.split(k)
        bound = 1.0 / np.sqrt(fan_in)
        w = jax.random.uniform(k1, (fan_in, fan_out), jnp.float32, -bound, bound)
        b = jax.random.uniform(k2, (1, fan_out), jnp.float32, -bound, bound)
        return w, b

    # BatchNorm1d eval: scale = gamma / sqrt(running_var + eps), shift = beta - running_mean * scale
    bn_scale = jnp.full((1, n_hidden), 1.0 / np.sqrt(1.0 + BN_EPS), jnp.float32)
    bn_shift = jnp.zeros((1, n_hidden), jnp.float32)

    in_dims = [n_input, n_hidden, n_hidden]
    for li in range(3):
        fan_in = in_dims[li] + n_cov
        w, b = linear(keys[li], fan_in, n_hidden)
        params[f"w{li}h"] = w[: in_dims[li], :]
        params[f"w{li}c"] = w[in_dims[li]:, :]
        params[f"b{li}"] = b
        params[f"s{li}"] = bn_scale  # gamma=1, running_var=1
        params[f"t{li}"] = bn_shift  # beta=0, running_mean=0
    params["wm"], params["bm"] = linear(keys[3], n_hidden, n_output)
    params["vparam"] = jnp.zeros((1, n_output), jnp.float32)  # Parameter(torch.zeros(1, n_output))
    return params


def _prepare_params(params, n_input, n_cov, hp, n_out_pad, wdtype=jnp.bfloat16):
    """Fold eval-mode BatchNorm (scale s, shift t) + bias into the linears, pad to lane-dense
    (128-multiple) shapes, and cast the matmul weights to bf16 (biases stay f32)."""
    def pad2d(a, rows, cols):
        return jnp.pad(a, ((0, rows - a.shape[0]), (0, cols - a.shape[1])))

    folded_wh, folded_wc, folded_b = [], [], []
    for li in range(3):
        s = params[f"s{li}"]
        t = params[f"t{li}"]
        wc = params[f"w{li}c"]
        if wc.shape[0] < n_cov:              # degenerate "no covariates" case: fake zero column
            wc = jnp.pad(wc, ((0, n_cov - wc.shape[0]), (0, 0)))
        folded_wh.append(params[f"w{li}h"] * s)     # Wh' = Wh * s   (per output column)
        folded_wc.append(wc * s)                    # Wc' = Wc * s
        folded_b.append(params[f"b{li}"] * s + t)   # b'  = b*s + t

    w0 = pad2d(jnp.concatenate([folded_wc[0], folded_wh[0]], axis=0),
               n_cov + n_input, hp).astype(wdtype)
    w12c = jnp.concatenate([pad2d(folded_wc[1], n_cov, hp),
                            pad2d(folded_wc[2], n_cov, hp)], axis=1).astype(wdtype)
    w1h = pad2d(folded_wh[1], hp, hp).astype(wdtype)
    w2h = pad2d(folded_wh[2], hp, hp).astype(wdtype)
    b0 = pad2d(folded_b[0], 1, hp).astype(jnp.float32)
    b1 = pad2d(folded_b[1], 1, hp).astype(jnp.float32)
    b2 = pad2d(folded_b[2], 1, hp).astype(jnp.float32)
    wm = pad2d(params["wm"], hp, n_out_pad).astype(wdtype)
    bm = pad2d(params["bm"], 1, n_out_pad).astype(jnp.float32)
    return (w0, b0, w12c, w1h, b1, w2h, b2, wm, bm)


# ----------------------------------------------------------------------------- tiling / budgets


def _padded_vmem_bytes(a):
    """VMEM footprint of a 2-D operand including sublane/lane tile padding."""
    r, c = a.shape
    sub = 16 if a.dtype == jnp.bfloat16 else 8
    return _round_up(max(r, 1), sub) * _round_up(max(c, 1), 128) * a.dtype.itemsize


def _vmem_limits():
    """Generation-aware VMEM budget (sizing target) and scoped-VMEM limit passed to Mosaic."""
    try:
        cap = int(pltpu.get_tpu_info().vmem_capacity_bytes)
        if cap <= 0:
            raise ValueError
    except Exception:
        cap = 64 * 1024 * 1024   # conservative fallback: v7x physical VMEM
    budget = (cap * 7) // 10     # target used when picking the row tile
    limit = (cap * 7) // 8       # scoped-VMEM limit handed to the compiler
    return budget, limit


def _choose_tb(B, n_in_tot, hp, n_out_pad, param_bytes, vmem_budget, tb_max=2048):
    """Largest row tile (multiple of 16 for bf16) fitting the VMEM budget, then resized so the
    grid has >= 2 steps when the batch allows (v7x megacore) and zero-row padding stays small."""
    def tile_bytes(tb):
        stream = 2 * tb * _round_up(n_in_tot, 128) * 2     # bf16 input, double-buffered
        out = 2 * tb * n_out_pad * 4                       # f32 output, double-buffered
        inter = 8 * tb * hp * 4                            # f32 h/z/covc temporaries + bf16 casts
        return stream + out + inter + 2 * param_bytes + (2 << 20)

    tb = min(tb_max, _round_up(max(B, 16), 16))
    while tb > 16 and tile_bytes(tb) > vmem_budget:
        tb = max(16, _round_up(tb // 2, 16))

    min_steps = 2 if B >= 32 else 1
    n_steps = max(_cdiv(B, tb), min_steps)
    tb = max(16, _round_up(_cdiv(B, n_steps), 16))
    return tb


# ----------------------------------------------------------------------------- wrapper


def encoder_decoder_forward(params, x, batch_index, cont, cat_list, n_cat_list, tb_max=2048):
    B, n_input = x.shape
    n_hidden = params["w0h"].shape[1]
    n_output = params["wm"].shape[1]

    # --- glue: one-hot covariates + concat (as scvi FCLayers does) ---
    cov_parts = []
    for c, n_cat in zip([batch_index] + list(cat_list), n_cat_list):
        if n_cat > 1:
            cov_parts.append(jax.nn.one_hot(c.reshape(-1), n_cat, dtype=x.dtype))
    if cont is not None:
        cov_parts.append(cont.astype(x.dtype))
    if cov_parts:
        cov = jnp.concatenate(cov_parts, axis=1)
    else:
        cov = jnp.zeros((B, 1), x.dtype)      # no covariates: single zero column (zero weights)
    n_cov = cov.shape[1]

    hp = _round_up(n_hidden, 128)             # lane-dense hidden width
    n_out_pad = _round_up(n_output, 128)      # lane-dense output stores

    weights = _prepare_params(params, n_input, n_cov, hp, n_out_pad)
    param_bytes = sum(_padded_vmem_bytes(a) for a in weights)

    # Streamed operand: [cov | x] in bf16 (halves the dominant HBM read; fuses upstream under jit).
    xc = jnp.concatenate([cov, x], axis=1).astype(jnp.bfloat16)
    n_in_tot = n_cov + n_input

    vmem_budget, vmem_limit = _vmem_limits()
    tb = _choose_tb(B, n_in_tot, hp, n_out_pad, param_bytes, vmem_budget, tb_max)
    grid_n = _cdiv(B, tb)
    b_pad = grid_n * tb
    if b_pad != B:
        xc = jnp.pad(xc, ((0, b_pad - B), (0, 0)))

    kernel = functools.partial(_encoder_decoder_kernel, n_cov, hp)

    def const_spec(a):
        # Grid-invariant operand: constant block index, so it is DMA'd into VMEM only once.
        return pl.BlockSpec(a.shape, lambda i: (0, 0))

    qm = pl.pallas_call(
        kernel,
        grid=(grid_n,),
        in_specs=[pl.BlockSpec((tb, n_in_tot), lambda i: (i, 0))]
                 + [const_spec(a) for a in weights],
        out_specs=pl.BlockSpec((tb, n_out_pad), lambda i: (i, 0)),
        out_shape=jax.ShapeDtypeStruct((b_pad, n_out_pad), jnp.float32),
        compiler_params=pltpu.CompilerParams(
            dimension_semantics=("parallel",),   # rows independent -> megacore sharding on v7x
            vmem_limit_bytes=vmem_limit,
        ),
    )(xc, *weights)
    qm = qm[:B, :n_output]

    # --- VarEncoder, mode='feature': per-feature only, so compute once here and broadcast ---
    v = jnp.clip(params["vparam"], -CLIP_EXP_THR, CLIP_EXP_THR)
    # torch.nn.Softplus (beta=1, threshold=20)
    v = jnp.where(v > 20.0, v, jnp.log1p(jnp.exp(jnp.minimum(v, 20.0))))
    v = jnp.nan_to_num(v)
    qv = jnp.broadcast_to(v, (B, n_output))

    # Normal(q_m, sqrt(q_v) + 1e-12); sample=False by default so no rsample.
    # TODO(synk): rsample path (sample=True) not implemented (host-side RNG choice).
    scale = jnp.sqrt(qv) + 1e-12
    return {"q_m": qm, "q_v": qv, "q_scale": scale}


# ----------------------------------------------------------------------------- demo


if __name__ == "__main__":
    B = 16
    n_input, n_output = 16, 8
    n_hidden = 32
    n_cat_list = [3, 4]   # [batch covariate, one extra categorical covariate]
    n_cont = 2
    n_cov = sum(n for n in n_cat_list if n > 1) + n_cont

    key = jax.random.PRNGKey(0)
    kx, kb, kc, kcont, kp = jax.random.split(key, 5)

    x = jax.random.normal(kx, (B, n_input), jnp.float32)
    batch_index = jax.random.randint(kb, (B, 1), 0, n_cat_list[0])
    cat1 = jax.random.randint(kc, (B, 1), 0, n_cat_list[1])
    cont = jax.random.normal(kcont, (B, n_cont), jnp.float32)

    params = init_params(kp, n_input, n_output, n_cov, n_hidden)

    fwd = jax.jit(lambda p, xx, bi, ct, c1:
                  encoder_decoder_forward(p, xx, bi, ct, [c1], n_cat_list))
    out = fwd(params, x, batch_index, cont, cat1)
    jax.block_until_ready(out)

    assert out["q_m"].shape == (B, n_output)
    assert out["q_v"].shape == (B, n_output)
    assert bool(jnp.all(out["q_v"] > 0.0))
    assert bool(jnp.all(jnp.isfinite(out["q_m"])))
    print("KERNEL_OK")
</pallas_src>

<mosaic_0001>
module attributes {stable_mosaic.version = 11 : i64} {
  func.func @_encoder_decoder_kernel(%arg0: i32, %arg1: memref<16x25xbf16, #tpu.memory_space<vmem>>, %arg2: memref<25x128xbf16, #tpu.memory_space<vmem>>, %arg3: memref<1x128xf32, #tpu.memory_space<vmem>>, %arg4: memref<9x256xbf16, #tpu.memory_space<vmem>>, %arg5: memref<128x128xbf16, #tpu.memory_space<vmem>>, %arg6: memref<1x128xf32, #tpu.memory_space<vmem>>, %arg7: memref<128x128xbf16, #tpu.memory_space<vmem>>, %arg8: memref<1x128xf32, #tpu.memory_space<vmem>>, %arg9: memref<128x128xbf16, #tpu.memory_space<vmem>>, %arg10: memref<1x128xf32, #tpu.memory_space<vmem>>, %arg11: memref<16x128xf32, #tpu.memory_space<vmem>>) attributes {dimension_semantics = [#tpu.dimension_semantics<parallel>], iteration_bounds = array<i64: 1>, scalar_prefetch = 0 : i64, scratch_operands = 0 : i64, tpu.core_type = #tpu.core_type<tc>, window_params = [{transform_indices = @transform_0, window_bounds = array<i64: 16, 25>}, {pipeline_mode = #tpu.pipeline_mode<synchronous>, transform_indices = @transform_1, window_bounds = array<i64: 25, 128>}, {pipeline_mode = #tpu.pipeline_mode<synchronous>, transform_indices = @transform_2, window_bounds = array<i64: 1, 128>}, {pipeline_mode = #tpu.pipeline_mode<synchronous>, transform_indices = @transform_3, window_bounds = array<i64: 9, 256>}, {pipeline_mode = #tpu.pipeline_mode<synchronous>, transform_indices = @transform_4, window_bounds = array<i64: 128, 128>}, {pipeline_mode = #tpu.pipeline_mode<synchronous>, transform_indices = @transform_5, window_bounds = array<i64: 1, 128>}, {pipeline_mode = #tpu.pipeline_mode<synchronous>, transform_indices = @transform_6, window_bounds = array<i64: 128, 128>}, {pipeline_mode = #tpu.pipeline_mode<synchronous>, transform_indices = @transform_7, window_bounds = array<i64: 1, 128>}, {pipeline_mode = #tpu.pipeline_mode<synchronous>, transform_indices = @transform_8, window_bounds = array<i64: 128, 128>}, {pipeline_mode = #tpu.pipeline_mode<synchronous>, transform_indices = @transform_9, window_bounds = array<i64: 1, 128>}, {transform_indices = @transform_10, window_bounds = array<i64: 16, 128>}]} {
    %c0 = arith.constant 0 : index
    %c0_0 = arith.constant 0 : index
    %0 = vector.load %arg1[%c0, %c0_0] : memref<16x25xbf16, #tpu.memory_space<vmem>>, vector<16x25xbf16>
    %1 = vector.extract_strided_slice %0 {offsets = [0, 0], sizes = [16, 9], strides = [1, 1]} : vector<16x25xbf16> to vector<16x9xbf16>
    %c0_1 = arith.constant 0 : index
    %c0_2 = arith.constant 0 : index
    %2 = vector.load %arg4[%c0_1, %c0_2] : memref<9x256xbf16, #tpu.memory_space<vmem>>, vector<9x256xbf16>
    %cst = arith.constant dense<0.000000e+00> : vector<16x256xf32>
    %3 = tpu.matmul %1, %2, %cst {dimension_numbers = #tpu.dot_dimension_numbers<[1], [0], [0], [1], [0, 0, 1, 1], [], []>} : vector<16x9xbf16>, vector<9x256xbf16>, vector<16x256xf32> -> vector<16x256xf32>
    %4 = vector.extract_strided_slice %3 {offsets = [0, 0], sizes = [16, 128], strides = [1, 1]} : vector<16x256xf32> to vector<16x128xf32>
    %5 = vector.extract_strided_slice %3 {offsets = [0, 128], sizes = [16, 128], strides = [1, 1]} : vector<16x256xf32> to vector<16x128xf32>
    %c0_3 = arith.constant 0 : index
    %c0_4 = arith.constant 0 : index
    %6 = vector.load %arg2[%c0_3, %c0_4] : memref<25x128xbf16, #tpu.memory_space<vmem>>, vector<25x128xbf16>
    %cst_5 = arith.constant dense<0.000000e+00> : vector<16x128xf32>
    %7 = tpu.matmul %0, %6, %cst_5 {dimension_numbers = #tpu.dot_dimension_numbers<[1], [0], [0], [1], [0, 0, 1, 1], [], []>} : vector<16x25xbf16>, vector<25x128xbf16>, vector<16x128xf32> -> vector<16x128xf32>
    %c0_6 = arith.constant 0 : index
    %c0_7 = arith.constant 0 : index
    %8 = vector.load %arg3[%c0_6, %c0_7] : memref<1x128xf32, #tpu.memory_space<vmem>>, vector<1x128xf32>
    %9 = vector.broadcast %8 : vector<1x128xf32> to vector<16x128xf32>
    %10 = arith.addf %7, %9 : vector<16x128xf32>
    %cst_8 = arith.constant 0.000000e+00 : f32
    %11 = vector.broadcast %cst_8 : f32 to vector<16x128xf32>
    %12 = arith.maximumf %10, %11 : vector<16x128xf32>
    %13 = arith.truncf %12 : vector<16x128xf32> to vector<16x128xbf16>
    %c0_9 = arith.constant 0 : index
    %c0_10 = arith.constant 0 : index
    %14 = vector.load %arg5[%c0_9, %c0_10] : memref<128x128xbf16, #tpu.memory_space<vmem>>, vector<128x128xbf16>
    %cst_11 = arith.constant dense<0.000000e+00> : vector<16x128xf32>
    %15 = tpu.matmul %13, %14, %cst_11 {dimension_numbers = #tpu.dot_dimension_numbers<[1], [0], [0], [1], [0, 0, 1, 1], [], []>} : vector<16x128xbf16>, vector<128x128xbf16>, vector<16x128xf32> -> vector<16x128xf32>
    %16 = arith.addf %15, %4 : vector<16x128xf32>
    %c0_12 = arith.constant 0 : index
    %c0_13 = arith.constant 0 : index
    %17 = vector.load %arg6[%c0_12, %c0_13] : memref<1x128xf32, #tpu.memory_space<vmem>>, vector<1x128xf32>
    %18 = vector.broadcast %17 : vector<1x128xf32> to vector<16x128xf32>
    %19 = arith.addf %16, %18 : vector<16x128xf32>
    %cst_14 = arith.constant 0.000000e+00 : f32
    %20 = vector.broadcast %cst_14 : f32 to vector<16x128xf32>
    %21 = arith.maximumf %19, %20 : vector<16x128xf32>
    %22 = arith.truncf %21 : vector<16x128xf32> to vector<16x128xbf16>
    %c0_15 = arith.constant 0 : index
    %c0_16 = arith.constant 0 : index
    %23 = vector.load %arg7[%c0_15, %c0_16] : memref<128x128xbf16, #tpu.memory_space<vmem>>, vector<128x128xbf16>
    %cst_17 = arith.constant dense<0.000000e+00> : vector<16x128xf32>
    %24 = tpu.matmul %22, %23, %cst_17 {dimension_numbers = #tpu.dot_dimension_numbers<[1], [0], [0], [1], [0, 0, 1, 1], [], []>} : vector<16x128xbf16>, vector<128x128xbf16>, vector<16x128xf32> -> vector<16x128xf32>
    %25 = arith.addf %24, %5 : vector<16x128xf32>
    %c0_18 = arith.constant 0 : index
    %c0_19 = arith.constant 0 : index
    %26 = vector.load %arg8[%c0_18, %c0_19] : memref<1x128xf32, #tpu.memory_space<vmem>>, vector<1x128xf32>
    %27 = vector.broadcast %26 : vector<1x128xf32> to vector<16x128xf32>
    %28 = arith.addf %25, %27 : vector<16x128xf32>
    %cst_20 = arith.constant 0.000000e+00 : f32
    %29 = vector.broadcast %cst_20 : f32 to vector<16x128xf32>
    %30 = arith.maximumf %28, %29 : vector<16x128xf32>
    %31 = arith.truncf %30 : vector<16x128xf32> to vector<16x128xbf16>
    %c0_21 = arith.constant 0 : index
    %c0_22 = arith.constant 0 : index
    %32 = vector.load %arg9[%c0_21, %c0_22] : memref<128x128xbf16, #tpu.memory_space<vmem>>, vector<128x128xbf16>
    %cst_23 = arith.constant dense<0.000000e+00> : vector<16x128xf32>
    %33 = tpu.matmul %31, %32, %cst_23 {dimension_numbers = #tpu.dot_dimension_numbers<[1], [0], [0], [1], [0, 0, 1, 1], [], []>} : vector<16x128xbf16>, vector<128x128xbf16>, vector<16x128xf32> -> vector<16x128xf32>
    %c0_24 = arith.constant 0 : index
    %c0_25 = arith.constant 0 : index
    %34 = vector.load %arg10[%c0_24, %c0_25] : memref<1x128xf32, #tpu.memory_space<vmem>>, vector<1x128xf32>
    %35 = vector.broadcast %34 : vector<1x128xf32> to vector<16x128xf32>
    %36 = arith.addf %33, %35 : vector<16x128xf32>
    %37 = arith.cmpf one, %36, %36 : vector<16x128xf32>
    %cst_26 = arith.constant 0.000000e+00 : f32
    %38 = vector.broadcast %cst_26 : f32 to vector<16x128xf32>
    %39 = arith.select %37, %38, %36 : vector<16x128xi1>, vector<16x128xf32>
    %cst_27 = arith.constant 0x7F800000 : f32
    %40 = vector.broadcast %cst_27 : f32 to vector<16x128xf32>
    %41 = arith.cmpf oeq, %39, %40 : vector<16x128xf32>
    %cst_28 = arith.constant 3.40282347E+38 : f32
    %42 = vector.broadcast %cst_28 : f32 to vector<16x128xf32>
    %43 = arith.select %41, %42, %39 : vector<16x128xi1>, vector<16x128xf32>
    %cst_29 = arith.constant 0xFF800000 : f32
    %44 = vector.broadcast %cst_29 : f32 to vector<16x128xf32>
    %45 = arith.cmpf oeq, %43, %44 : vector<16x128xf32>
    %cst_30 = arith.constant -3.40282347E+38 : f32
    %46 = vector.broadcast %cst_30 : f32 to vector<16x128xf32>
    %47 = arith.select %45, %46, %43 : vector<16x128xi1>, vector<16x128xf32>
    %c0_31 = arith.constant 0 : index
    %c0_32 = arith.constant 0 : index
    %48 = vector.load %arg11[%c0_31, %c0_32] : memref<16x128xf32, #tpu.memory_space<vmem>>, vector<16x128xf32>
    tpu.vector_store %arg11[%c0_31, %c0_32], %47 {strides = array<i32>} : memref<16x128xf32, #tpu.memory_space<vmem>>, vector<16x128xf32>,
    return
  }
  func.func @transform_0(%arg0: i32) -> (i32, i32) {
    %c0_i32 = arith.constant 0 : i32
    %c0_i32_0 = arith.constant 0 : i32
    return %arg0, %c0_i32 : i32, i32
  }
  func.func @transform_1(%arg0: i32) -> (i32, i32) {
    %c0_i32 = arith.constant 0 : i32
    %c0_i32_0 = arith.constant 0 : i32
    %c0_i32_1 = arith.constant 0 : i32
    return %c0_i32, %c0_i32_0 : i32, i32
  }
  func.func @transform_2(%arg0: i32) -> (i32, i32) {
    %c0_i32 = arith.constant 0 : i32
    %c0_i32_0 = arith.constant 0 : i32
    %c0_i32_1 = arith.constant 0 : i32
    return %c0_i32, %c0_i32_0 : i32, i32
  }
  func.func @transform_3(%arg0: i32) -> (i32, i32) {
    %c0_i32 = arith.constant 0 : i32
    %c0_i32_0 = arith.constant 0 : i32
    %c0_i32_1 = arith.constant 0 : i32
    return %c0_i32, %c0_i32_0 : i32, i32
  }
  func.func @transform_4(%arg0: i32) -> (i32, i32) {
    %c0_i32 = arith.constant 0 : i32
    %c0_i32_0 = arith.constant 0 : i32
    %c0_i32_1 = arith.constant 0 : i32
    return %c0_i32, %c0_i32_0 : i32, i32
  }
  func.func @transform_5(%arg0: i32) -> (i32, i32) {
    %c0_i32 = arith.constant 0 : i32
    %c0_i32_0 = arith.constant 0 : i32
    %c0_i32_1 = arith.constant 0 : i32
    return %c0_i32, %c0_i32_0 : i32, i32
  }
  func.func @transform_6(%arg0: i32) -> (i32, i32) {
    %c0_i32 = arith.constant 0 : i32
    %c0_i32_0 = arith.constant 0 : i32
    %c0_i32_1 = arith.constant 0 : i32
    return %c0_i32, %c0_i32_0 : i32, i32
  }
  func.func @transform_7(%arg0: i32) -> (i32, i32) {
    %c0_i32 = arith.constant 0 : i32
    %c0_i32_0 = arith.constant 0 : i32
    %c0_i32_1 = arith.constant 0 : i32
    return %c0_i32, %c0_i32_0 : i32, i32
  }
  func.func @transform_8(%arg0: i32) -> (i32, i32) {
    %c0_i32 = arith.constant 0 : i32
    %c0_i32_0 = arith.constant 0 : i32
    %c0_i32_1 = arith.constant 0 : i32
    return %c0_i32, %c0_i32_0 : i32, i32
  }
  func.func @transform_9(%arg0: i32) -> (i32, i32) {
    %c0_i32 = arith.constant 0 : i32
    %c0_i32_0 = arith.constant 0 : i32
    %c0_i32_1 = arith.constant 0 : i32
    return %c0_i32, %c0_i32_0 : i32, i32
  }
  func.func @transform_10(%arg0: i32) -> (i32, i32) {
    %c0_i32 = arith.constant 0 : i32
    %c0_i32_0 = arith.constant 0 : i32
    return %arg0, %c0_i32 : i32, i32
  }
}

</mosaic_0001>

<bundles_post_ra>
// kernel: _lambda_.1
= control target key start
LH: loop header
LB: loop body
LE: loop exit
PB: predicated region body
PF: predicated region fallthrough
CT: control target
= control target key end

     0   :  { %vm57_vm0 = vcmask 1043456   ;;  %vm58_vm1 = vcmask 1044480   ;;  %v713_v1 = vmov 0   ;;  %v714_v2 = vmov 65535   ;;  %s917_s1 = inlined_call_operand.vmem [shape: bf16[25,128], index: 1, kind: input, shape index: {}]   ;;  %s918_s3 = inlined_call_operand.vmem [shape: bf16[9,256], index: 3, kind: input, shape index: {}]   ;;  %s919_s0 = inlined_call_operand.vmem [shape: bf16[16,25], index: 0, kind: input, shape index: {}]   ;;  %s920_s4 = inlined_call_operand.vmem [shape: bf16[128,128], index: 4, kind: input, shape index: {}]   ;;  %s921_s6 = inlined_call_operand.vmem [shape: bf16[128,128], index: 6, kind: input, shape index: {}]   ;;  %s922_s2 = inlined_call_operand.vmem [shape: f32[1,128], index: 2, kind: input, shape index: {}]   ;;  %s923_s8 = inlined_call_operand.vmem [shape: bf16[128,128], index: 8, kind: input, shape index: {}]   ;;  %s924_s5 = inlined_call_operand.vmem [shape: f32[1,128], index: 5, kind: input, shape index: {}]   ;;  %s925_s7 = inlined_call_operand.vmem [shape: f32[1,128], index: 7, kind: input, shape index: {}]   ;;  %s926_s9 = inlined_call_operand.vmem [shape: f32[1,128], index: 9, kind: input, shape index: {}]   ;;  %s927_s10 = inlined_call_operand.vmem [shape: f32[16,128], index: 10, kind: output, shape index: {}]  }
   0x1   :  { %v683_v0 = vld [vmem:[%s918_s3 + $0x4] ss:$8 sps:$4 sm:$0x1f]   ;;  %99 = vmatprep.mubr.bf16.mxu1 %v713_v1  ;;  %v59_v3 = vsel %vm57_vm0, 4294967295, %v714_v2  ;;  %v715_v10 = vmov 0.0   ;;  %v689_v11 = vld [vmem:[%s920_s4 + $0x38] sm:$0xff]  }
   0x2   :  { %v60_v4 = vsel %vm58_vm1, %v59_v3, 0  ;;  %v685_v5 = vld [vmem:[%s917_s1 + $0x8] sm:$0x1f]   ;;  %v687_v9 = vld [vmem:[%s919_s0] sm:$0xff]   ;;  %619 = vmatprep.subr.bf16.mxu0 %v715_v10  ;;  %vm716_vm2 = vmmov 0   ;;  %vm53_vm3 = vcmask 72704  }
   0x3   :  { %v686_v6 = vld [vmem:[%s918_s3] ss:$8 sps:$4 sm:$0x1f]   ;;  %v65_v7 = vand.u32 %v683_v0, %v60_v4  ;;  %635 = vmatprep.mubr.msk.bf16.mxu0 %vm716_vm2, %v715_v10  ;;  %v136_v12 = vand.u32 %v685_v5, %v60_v4  ;;  %620 = vmatpush3.bf16.msra.mxu0 %v689_v11  ;;  %v690_v13 = vld [vmem:[%s920_s4 + $0x30] sm:$0xff]   ;;  %vm132_vm4 = vcmask 203776   ;;  %v693_v17 = vld [vmem:[%s920_s4 + $0x18] sm:$0xff]  }
   0x4   :  { %v62_v8 = vand.u32 %v686_v6, %v60_v4  ;;  %v688_v14 = vld [vmem:[%s917_s1] sm:$0xff]   ;;  %621 = vmatprep.subr.bf16.mxu0 %v715_v10  ;;  %v691_v15 = vld [vmem:[%s920_s4 + $0x28] sm:$0xff]   ;;  %v694_v18 = vld [vmem:[%s920_s4 + $0x10] sm:$0xff]  }
   0x5   :  { %81 = vmatprep.subr.bf16.mxu1 %v65_v7  ;;  %v692_v16 = vld [vmem:[%s920_s4 + $0x20] sm:$0xff]   ;;  %v695_v19 = vld [vmem:[%s920_s4 + $0x8] sm:$0xff]   ;;  %v697_v21 = vld [vmem:[%s921_s6 + $0x38] sm:$0xff]  }
   0x6   :  { %82 = vmatpush1.bf16.msra.mxu1 %v62_v8  ;;  %v696_v20 = vld [vmem:[%s920_s4] sm:$0xff]   ;;  %v698_v22 = vld [vmem:[%s921_s6 + $0x30] sm:$0xff]   ;;  %v699_v23 = vld [vmem:[%s921_s6 + $0x28] sm:$0xff]  }
   0x7   :  { %611 = vmatprep.subr.bf16.mxu1 %v715_v10  ;;  %622 = vmatpush3.bf16.msra.mxu0 %v690_v13  ;;  %v700_v24 = vld [vmem:[%s921_s6 + $0x20] sm:$0xff]   ;;  %v701_v25 = vld [vmem:[%s921_s6 + $0x18] sm:$0xff]   ;;  %v702_v40 = vld [vmem:[%s921_s6 + $0x10] sm:$0xff]  }
   0x8   :  { %623 = vmatprep.subr.bf16.mxu0 %v715_v10  ;;  %v550_v30 = vld [vmem:[%s922_s2] ss:$0 sm:$0xff]  ;;  %v703_v41 = vld [vmem:[%s921_s6 + $0x8] sm:$0xff]   ;;  %v705_v43 = vld [vmem:[%s923_s8 + $0x38] sm:$0xff]  }
   0x9   :  { %549 = vmatmul.mubr.msk.bf16.vlgmr.msra.gmra.mxu1 %vm53_vm3, %v687_v9  ;;  %v704_v42 = vld [vmem:[%s921_s6] sm:$0xff]   ;;  %v706_v44 = vld [vmem:[%s923_s8 + $0x30] sm:$0xff]   ;;  %v707_v45 = vld [vmem:[%s923_s8 + $0x28] sm:$0xff]  }
   0xa   :  { %612 = vmatpush3.bf16.msra.mxu1 %v136_v12  ;;  %615 = vmatprep.mubr.msk.bf16.mxu1 %vm716_vm2, %v715_v10  ;;  %v708_v46 = vld [vmem:[%s923_s8 + $0x20] sm:$0xff]   ;;  %v709_v47 = vld [vmem:[%s923_s8 + $0x18] sm:$0xff]   ;;  %v710_v60 = vld [vmem:[%s923_s8 + $0x10] sm:$0xff]  }
   0xb   :  { %613 = vmatprep.subr.bf16.mxu1 %v715_v10  ;;  %624 = vmatpush3.bf16.msra.mxu0 %v691_v15  ;;  %v562_v50 = vld [vmem:[%s924_s5] ss:$0 sm:$0xff]  ;;  %v711_v61 = vld [vmem:[%s923_s8 + $0x8] sm:$0xff]  }
   0xc   :  { %625 = vmatprep.subr.bf16.mxu0 %v715_v10  ;;  %v712_v62 = vld [vmem:[%s923_s8] sm:$0xff]  }
   0xd   :  { %v571_v1 = vld [vmem:[%s925_s7] ss:$0 sm:$0xff] }
   0xe   :  { %614 = vmatpush3.bf16.msra.mxu1 %v688_v14  ;;  %v572_v11 = vld [vmem:[%s926_s9] ss:$0 sm:$0xff] }
   0xf   :  { %639 = vmatprep.subr.bf16.mxu1 %v715_v10  ;;  %626 = vmatpush3.bf16.msra.mxu0 %v692_v16 }
  0x10   :  { %627 = vmatprep.subr.bf16.mxu0 %v715_v10 }
  0x11   :  { %616 = vmatmul.mubr.msk.bf16.vlgmr.msra.gmra.mxu1 %vm132_vm4, %v687_v9 }
  0x12   :  { %655 = vmatprep.mubr.msk.bf16.mxu1 %vm716_vm2, %v715_v10  ;;  %640 = vmatpush3.bf16.msra.mxu1 %v697_v21 }
  0x13   :  { %628 = vmatpush3.bf16.msra.mxu0 %v693_v17  ;;  %641 = vmatprep.subr.bf16.mxu1 %v715_v10 }
  0x14   :  { %629 = vmatprep.subr.bf16.mxu0 %v715_v10 }
  0x16   :  { %642 = vmatpush3.bf16.msra.mxu1 %v698_v22 }
  0x17   :  { %630 = vmatpush3.bf16.msra.mxu0 %v694_v18  ;;  %643 = vmatprep.subr.bf16.mxu1 %v715_v10 }
  0x18   :  { %631 = vmatprep.subr.bf16.mxu0 %v715_v10 }
  0x1a   :  { %644 = vmatpush3.bf16.msra.mxu1 %v699_v23 }
  0x1b   :  { %632 = vmatpush3.bf16.msra.mxu0 %v695_v19  ;;  %645 = vmatprep.subr.bf16.mxu1 %v715_v10 }
  0x1c   :  { %633 = vmatprep.subr.bf16.mxu0 %v715_v10 }
  0x1e   :  { %646 = vmatpush3.bf16.msra.mxu1 %v700_v24 }
  0x1f   :  { %634 = vmatpush3.bf16.msra.mxu0 %v696_v20  ;;  %647 = vmatprep.subr.bf16.mxu1 %v715_v10 }
  0x20   :  { %659 = vmatprep.subr.bf16.mxu0 %v715_v10 }
  0x22   :  { %648 = vmatpush3.bf16.msra.mxu1 %v701_v25 }
  0x23   :  { %649 = vmatprep.subr.bf16.mxu1 %v715_v10 }
  0x26   :  { %650 = vmatpush3.bf16.msra.mxu1 %v702_v40 }
  0x27   :  { %651 = vmatprep.subr.bf16.mxu1 %v715_v10 }
  0x2a   :  { %652 = vmatpush3.bf16.msra.mxu1 %v703_v41 }
  0x2b   :  { %653 = vmatprep.subr.bf16.mxu1 %v715_v10 }
  0x2e   :  { %654 = vmatpush3.bf16.msra.mxu1 %v704_v42 }
  0xc9   :  { %v101_v26 = vpop.f32.mrf.mxu1 }
  0xcb   :  { %v849_v27 = vpop.f32.mrf.mxu1 }
  0xcd   :  { %v105_v28 = vpop.f32.mrf.mxu1 }
  0xcf   :  { %v851_v29 = vpop.f32.mrf.mxu1 }
  0xd1   :  { %v172_v31 = vpop.f32.mrf.mxu1 }
  0xd2   :  { %v173_v33 = vadd.f32 %v550_v30, %v172_v31 }
  0xd3   :  { %v617_v32 = vpop.f32.mrf.mxu1 }
  0xd4   :  { %v179_v37 = vmax.f32 %v173_v33, 0.0 }
  0xd5   :  { %v175_v34 = vpop.f32.mrf.mxu1 }
  0xd6   :  { %v176_v35 = vadd.f32 %v550_v30, %v175_v34 }
  0xd7   :  { %v618_v36 = vpop.f32.mrf.mxu1 }
  0xd8   :  { %v180_v38 = vmax.f32 %v176_v35, 0.0 }
  0xda   :  { %v181_v39 = vpack.c.bf16 %v180_v38, %v179_v37 }
  0xdc   :  { %636 = vmatmul.mubr.bf16.vlgmr.msra.gmra.mxu0 %v181_v39 }
  0xdd   :  { %675 = vmatprep.mubr.msk.bf16.mxu0 %vm716_vm2, %v715_v10  ;;  %660 = vmatpush3.bf16.msra.mxu0 %v705_v43 }
  0xde   :  { %661 = vmatprep.subr.bf16.mxu0 %v715_v10 }
  0xe1   :  { %662 = vmatpush3.bf16.msra.mxu0 %v706_v44 }
  0xe2   :  { %663 = vmatprep.subr.bf16.mxu0 %v715_v10 }
  0xe5   :  { %664 = vmatpush3.bf16.msra.mxu0 %v707_v45 }
  0xe6   :  { %665 = vmatprep.subr.bf16.mxu0 %v715_v10 }
  0xe9   :  { %666 = vmatpush3.bf16.msra.mxu0 %v708_v46 }
  0xea   :  { %667 = vmatprep.subr.bf16.mxu0 %v715_v10 }
  0xed   :  { %668 = vmatpush3.bf16.msra.mxu0 %v709_v47 }
  0xee   :  { %669 = vmatprep.subr.bf16.mxu0 %v715_v10 }
  0xf1   :  { %670 = vmatpush3.bf16.msra.mxu0 %v710_v60 }
  0xf2   :  { %671 = vmatprep.subr.bf16.mxu0 %v715_v10 }
  0xf5   :  { %672 = vmatpush3.bf16.msra.mxu0 %v711_v61 }
  0xf6   :  { %673 = vmatprep.subr.bf16.mxu0 %v715_v10 }
  0xf9   :  { %674 = vmatpush3.bf16.msra.mxu0 %v712_v62 }
 0x19c   :  { %v280_v48 = vpop.f32.mrf.mxu0 }
 0x19d   :  { %v281_v49 = vadd.f32 %v280_v48, %v101_v26 }
 0x19e   :  { %v637_v51 = vpop.f32.mrf.mxu0 }
 0x19f   :  { %v294_v53 = vadd.f32 %v562_v50, %v281_v49 }
 0x1a0   :  { %v283_v52 = vpop.f32.mrf.mxu0 }
 0x1a1   :  { %v284_v54 = vadd.f32 %v283_v52, %v105_v28  ;;  %v296_v57 = vmax.f32 %v294_v53, 0.0 }
 0x1a2   :  { %v638_v55 = vpop.f32.mrf.mxu0 }
 0x1a3   :  { %v295_v56 = vadd.f32 %v562_v50, %v284_v54 }
 0x1a5   :  { %v297_v58 = vmax.f32 %v295_v56, 0.0 }
 0x1a7   :  { %v298_v59 = vpack.c.bf16 %v297_v58, %v296_v57 }
 0x1a9   :  { %656 = vmatmul.mubr.bf16.vlgmr.msra.gmra.mxu1 %v298_v59 }
 0x269   :  { %v397_v63 = vpop.f32.mrf.mxu1 }
 0x26a   :  { %v398_v0 = vadd.f32 %v397_v63, %v849_v27 }
 0x26b   :  { %v657_v2 = vpop.f32.mrf.mxu1 }
 0x26c   :  { %v411_v4 = vadd.f32 %v571_v1, %v398_v0 }
 0x26d   :  { %v400_v3 = vpop.f32.mrf.mxu1 }
 0x26e   :  { %v401_v5 = vadd.f32 %v400_v3, %v851_v29  ;;  %v413_v8 = vmax.f32 %v411_v4, 0.0 }
 0x26f   :  { %v658_v6 = vpop.f32.mrf.mxu1 }
 0x270   :  { %v412_v7 = vadd.f32 %v571_v1, %v401_v5 }
 0x272   :  { %v414_v9 = vmax.f32 %v412_v7, 0.0 }
 0x274   :  { %v415_v10 = vpack.c.bf16 %v414_v9, %v413_v8 }
 0x276   :  { %676 = vmatmul.mubr.bf16.vlgmr.msra.gmra.mxu0 %v415_v10 }
 0x336   :  { %v521_v12 = vpop.f32.mrf.mxu0 }
 0x337   :  { %v522_v13 = vadd.f32 %v572_v11, %v521_v12 }
 0x338   :  { %v677_v14 = vpop.f32.mrf.mxu0 }
 0x339   :  { %vm528_vm5 = vcmp.ne.f32.partialorder %v522_v13, %v522_v13 }
 0x33a   :  { %v530_v15 = vsel %vm528_vm5, 0.0, %v522_v13  ;;  %v524_v16 = vpop.f32.mrf.mxu0 }
 0x33b   :  { %vm532_vm6 = vcmp.eq.f32.partialorder %v530_v15, inf  ;;  %v525_v17 = vadd.f32 %v572_v11, %v524_v16 }
 0x33c   :  { %v534_v18 = vsel %vm532_vm6, 3.4028235e+38, %v530_v15  ;;  %v678_v19 = vpop.f32.mrf.mxu0 }
 0x33d   :  { %vm536_vm7 = vcmp.eq.f32.partialorder %v534_v18, -inf  ;;  %vm529_vm8 = vcmp.ne.f32.partialorder %v525_v17, %v525_v17 }
 0x33e   :  { %v538_v20 = vsel %vm536_vm7, -3.4028235e+38, %v534_v18  ;;  %v531_v21 = vsel %vm529_vm8, 0.0, %v525_v17 }
 0x33f   :  { %540 = vst [vmem:[%s927_s10] sm:$0xff] %v538_v20  ;;  %vm533_vm9 = vcmp.eq.f32.partialorder %v531_v21, inf }
 0x340   :  { %v535_v22 = vsel %vm533_vm9, 3.4028235e+38, %v531_v21 }
 0x341   :  { %vm537_vm10 = vcmp.eq.f32.partialorder %v535_v22, -inf }
 0x342   :  { %v539_v23 = vsel %vm537_vm10, -3.4028235e+38, %v535_v22 }
 0x343   :  { %541 = vst [vmem:[%s927_s10 + $0x8] sm:$0xff] %v539_v23 }

</bundles_post_ra>
